<compile_context>
chip_gen: v7x
topology: tpu7x:2x2x1
jax: 0.10.0
libtpu: 0.0.40
codegen_flags: <defaults>
</compile_context>

<pallas_src>
import functools

import jax
import jax.numpy as jnp
from jax import lax
from jax.experimental import pallas as pl
from jax.experimental.pallas import tpu as pltpu


def _cross_attn_kernel(q_ref, kv_ref, wq_ref, bq_ref, wk_ref, wv_ref, bv_ref,
                       o_ref, *, batch, q_len, kv_len, dim, scale):
    # q_ref:  (B*I, D) f32   kv_ref: (B*J, D) f32
    # wq/wk/wv: (D, D) f32 (nn.Linear weights, pre-transposed so y = x @ W + b)
    # bq/bv:  (1, D)  f32    o_ref:  (B*I, D) f32
    f32 = jnp.float32
    bf16 = jnp.bfloat16
    del dim  # shapes are static; kept for clarity of the signature

    # In-kernel casts: VPU work hidden under the MXU, no wrapper-side XLA ops.
    qx = q_ref[...].astype(bf16)
    kvx = kv_ref[...].astype(bf16)
    wq = wq_ref[...].astype(bf16)
    wk = wk_ref[...].astype(bf16)
    wv = wv_ref[...].astype(bf16)

    # Projections on the flattened batch (single MXU push each, f32 accumulate).
    # Softmax scale folded into projected Q (free); K bias dropped
    # (softmax over j is invariant to a per-row constant).
    qp = (jnp.dot(qx, wq, preferred_element_type=f32) + bq_ref[...]) * scale
    kp = jnp.dot(kvx, wk, preferred_element_type=f32)
    vp = jnp.dot(kvx, wv, preferred_element_type=f32) + bv_ref[...]

    # A @ B.T without an explicit transpose: contract the last dims.
    nt = (((1,), (1,)), ((), ()))

    for b in range(batch):                     # B is tiny & static -> unrolled
        qb = qp[b * q_len:(b + 1) * q_len, :].astype(bf16)
        kb = kp[b * kv_len:(b + 1) * kv_len, :].astype(bf16)
        vb = vp[b * kv_len:(b + 1) * kv_len, :].astype(bf16)

        sim = lax.dot_general(qb, kb, dimension_numbers=nt,
                              preferred_element_type=f32)
        # Numerically stable softmax over j (f32); denom via EUP approx recip.
        sim = sim - jnp.max(sim, axis=-1, keepdims=True)
        p = jnp.exp(sim)
        attn = p * pl.reciprocal(jnp.sum(p, axis=-1, keepdims=True), approx=True)

        out_b = jnp.dot(attn.astype(bf16), vb, preferred_element_type=f32)
        o_ref[b * q_len:(b + 1) * q_len, :] = out_b.astype(o_ref.dtype)


def cross_attention(q, k_v, params, *, scale=None):
    """q: (B, I, D), k_v: (B, J, D).

    params: dict with wq, bq, wk, bk, wv, bv.  Weights are stored
    pre-transposed as (D, D) so y = x @ W + b matches nn.Linear.
    bk is accepted but unused (softmax is invariant to it).
    Dropout (drop_rate=0.0) is the identity.
    """
    B, I, D = q.shape
    Bk, J, Dk = k_v.shape
    assert Bk == B and Dk == D
    if scale is None:
        scale = float(D) ** (-0.5)

    # Wrapper does only metadata reshapes -- all compute/casts live in-kernel.
    q2 = q.reshape(B * I, D)
    kv2 = k_v.reshape(B * J, D)
    bq = params["bq"].reshape(1, D).astype(jnp.float32)
    bv = params["bv"].reshape(1, D).astype(jnp.float32)

    kernel = functools.partial(_cross_attn_kernel, batch=B, q_len=I,
                               kv_len=J, dim=D, scale=float(scale))

    # Single (grid-less) invocation: whole arrays live in VMEM, no pipelining
    # overhead, no double-buffered weight copies.
    vmem = pl.BlockSpec(memory_space=pltpu.MemorySpace.VMEM)
    out = pl.pallas_call(
        kernel,
        out_shape=jax.ShapeDtypeStruct((B * I, D), q.dtype),
        in_specs=[vmem] * 7,
        out_specs=vmem,
    )(q2, kv2, params["wq"], bq, params["wk"], params["wv"], bv)
    return out.reshape(B, I, D)


def cross_attention_ref(q, k_v, params, *, scale=None):
    """Pure-JAX (f32) reference mirroring the PyTorch forward."""
    D = q.shape[-1]
    if scale is None:
        scale = float(D) ** (-0.5)
    qp = q @ params["wq"] + params["bq"]
    kp = k_v @ params["wk"] + params["bk"]
    vp = k_v @ params["wv"] + params["bv"]
    sim = jnp.einsum("bid,bjd->bij", qp, kp) * scale
    attn = jax.nn.softmax(sim, axis=-1)
    return jnp.einsum("bij,bjd->bid", attn, vp)


if __name__ == "__main__":
    # Small shapes consistent with the module's forward:
    #   q:   (B, I, D) = (2, 8, 32)
    #   k_v: (B, J, D) = (2, 8, 32)
    B, I, J, D = 2, 8, 8, 32

    key = jax.random.PRNGKey(0)
    kq, kkv, k1, k2, k3, k4, k5, k6 = jax.random.split(key, 8)

    q = jax.random.normal(kq, (B, I, D), dtype=jnp.float32)
    k_v = jax.random.normal(kkv, (B, J, D), dtype=jnp.float32)

    # Deterministic parameter init (nn.Linear-like scale).
    bound = D ** (-0.5)
    params = {
        "wq": jax.random.uniform(k1, (D, D), jnp.float32, -bound, bound),
        "bq": jax.random.uniform(k2, (D,), jnp.float32, -bound, bound),
        "wk": jax.random.uniform(k3, (D, D), jnp.float32, -bound, bound),
        "bk": jax.random.uniform(k4, (D,), jnp.float32, -bound, bound),
        "wv": jax.random.uniform(k5, (D, D), jnp.float32, -bound, bound),
        "bv": jax.random.uniform(k6, (D,), jnp.float32, -bound, bound),
    }

    out = jax.block_until_ready(cross_attention(q, k_v, params))
    ref = jax.block_until_ready(cross_attention_ref(q, k_v, params))

    assert out.shape == (B, I, D), out.shape
    # bf16 MXU operands + approx reciprocal -> loosened tolerance vs f32 ref.
    assert jnp.allclose(out, ref, atol=5e-2, rtol=5e-2), (
        float(jnp.max(jnp.abs(out - ref))))

    print("KERNEL_OK")
</pallas_src>

<mosaic_0001>
module attributes {stable_mosaic.version = 11 : i64} {
  func.func @_cross_attn_kernel(%arg0: memref<16x32xf32, #tpu.memory_space<vmem>>, %arg1: memref<16x32xf32, #tpu.memory_space<vmem>>, %arg2: memref<32x32xf32, #tpu.memory_space<vmem>>, %arg3: memref<1x32xf32, #tpu.memory_space<vmem>>, %arg4: memref<32x32xf32, #tpu.memory_space<vmem>>, %arg5: memref<32x32xf32, #tpu.memory_space<vmem>>, %arg6: memref<1x32xf32, #tpu.memory_space<vmem>>, %arg7: memref<16x32xf32, #tpu.memory_space<vmem>>) attributes {dimension_semantics = [], scalar_prefetch = 0 : i64, scratch_operands = 0 : i64, tpu.core_type = #tpu.core_type<tc>} {
    %c0 = arith.constant 0 : index
    %c0_0 = arith.constant 0 : index
    %0 = vector.load %arg0[%c0, %c0_0] : memref<16x32xf32, #tpu.memory_space<vmem>>, vector<16x32xf32>
    %1 = arith.truncf %0 : vector<16x32xf32> to vector<16x32xbf16>
    %c0_1 = arith.constant 0 : index
    %c0_2 = arith.constant 0 : index
    %2 = vector.load %arg1[%c0_1, %c0_2] : memref<16x32xf32, #tpu.memory_space<vmem>>, vector<16x32xf32>
    %3 = arith.truncf %2 : vector<16x32xf32> to vector<16x32xbf16>
    %c0_3 = arith.constant 0 : index
    %c0_4 = arith.constant 0 : index
    %4 = vector.load %arg2[%c0_3, %c0_4] : memref<32x32xf32, #tpu.memory_space<vmem>>, vector<32x32xf32>
    %5 = arith.truncf %4 : vector<32x32xf32> to vector<32x32xbf16>
    %c0_5 = arith.constant 0 : index
    %c0_6 = arith.constant 0 : index
    %6 = vector.load %arg4[%c0_5, %c0_6] : memref<32x32xf32, #tpu.memory_space<vmem>>, vector<32x32xf32>
    %7 = arith.truncf %6 : vector<32x32xf32> to vector<32x32xbf16>
    %c0_7 = arith.constant 0 : index
    %c0_8 = arith.constant 0 : index
    %8 = vector.load %arg5[%c0_7, %c0_8] : memref<32x32xf32, #tpu.memory_space<vmem>>, vector<32x32xf32>
    %9 = arith.truncf %8 : vector<32x32xf32> to vector<32x32xbf16>
    %cst = arith.constant dense<0.000000e+00> : vector<16x32xf32>
    %10 = tpu.matmul %1, %5, %cst {dimension_numbers = #tpu.dot_dimension_numbers<[1], [0], [0], [1], [0, 0, 1, 1], [], []>} : vector<16x32xbf16>, vector<32x32xbf16>, vector<16x32xf32> -> vector<16x32xf32>
    %c0_9 = arith.constant 0 : index
    %c0_10 = arith.constant 0 : index
    %11 = vector.load %arg3[%c0_9, %c0_10] : memref<1x32xf32, #tpu.memory_space<vmem>>, vector<1x32xf32>
    %12 = vector.broadcast %11 : vector<1x32xf32> to vector<16x32xf32>
    %13 = arith.addf %10, %12 : vector<16x32xf32>
    %cst_11 = arith.constant 0.176776692 : f32
    %14 = vector.broadcast %cst_11 : f32 to vector<16x32xf32>
    %15 = arith.mulf %13, %14 : vector<16x32xf32>
    %cst_12 = arith.constant dense<0.000000e+00> : vector<16x32xf32>
    %16 = tpu.matmul %3, %7, %cst_12 {dimension_numbers = #tpu.dot_dimension_numbers<[1], [0], [0], [1], [0, 0, 1, 1], [], []>} : vector<16x32xbf16>, vector<32x32xbf16>, vector<16x32xf32> -> vector<16x32xf32>
    %cst_13 = arith.constant dense<0.000000e+00> : vector<16x32xf32>
    %17 = tpu.matmul %3, %9, %cst_13 {dimension_numbers = #tpu.dot_dimension_numbers<[1], [0], [0], [1], [0, 0, 1, 1], [], []>} : vector<16x32xbf16>, vector<32x32xbf16>, vector<16x32xf32> -> vector<16x32xf32>
    %c0_14 = arith.constant 0 : index
    %c0_15 = arith.constant 0 : index
    %18 = vector.load %arg6[%c0_14, %c0_15] : memref<1x32xf32, #tpu.memory_space<vmem>>, vector<1x32xf32>
    %19 = vector.broadcast %18 : vector<1x32xf32> to vector<16x32xf32>
    %20 = arith.addf %17, %19 : vector<16x32xf32>
    %21 = vector.extract_strided_slice %15 {offsets = [0, 0], sizes = [8, 32], strides = [1, 1]} : vector<16x32xf32> to vector<8x32xf32>
    %22 = arith.truncf %21 : vector<8x32xf32> to vector<8x32xbf16>
    %23 = vector.extract_strided_slice %16 {offsets = [0, 0], sizes = [8, 32], strides = [1, 1]} : vector<16x32xf32> to vector<8x32xf32>
    %24 = arith.truncf %23 : vector<8x32xf32> to vector<8x32xbf16>
    %25 = vector.extract_strided_slice %20 {offsets = [0, 0], sizes = [8, 32], strides = [1, 1]} : vector<16x32xf32> to vector<8x32xf32>
    %26 = arith.truncf %25 : vector<8x32xf32> to vector<8x32xbf16>
    %cst_16 = arith.constant dense<0.000000e+00> : vector<8x8xf32>
    %27 = tpu.matmul %22, %24, %cst_16 {dimension_numbers = #tpu.dot_dimension_numbers<[1], [1], [0], [0], [0, 0, 1, 0], [], []>} : vector<8x32xbf16>, vector<8x32xbf16>, vector<8x8xf32> -> vector<8x8xf32>
    %cst_17 = arith.constant dense<0xFF800000> : vector<8xf32>
    %28 = vector.multi_reduction <maximumf>, %27, %cst_17 [1] : vector<8x8xf32> to vector<8xf32>
    %29 = vector.shape_cast %28 : vector<8xf32> to vector<8x1xf32>
    %30 = vector.broadcast %29 : vector<8x1xf32> to vector<8x8xf32>
    %31 = arith.subf %27, %30 : vector<8x8xf32>
    %32 = math.exp %31 : vector<8x8xf32>
    %cst_18 = arith.constant dense<0.000000e+00> : vector<8xf32>
    %33 = vector.multi_reduction <add>, %32, %cst_18 [1] : vector<8x8xf32> to vector<8xf32>
    %34 = vector.shape_cast %33 : vector<8xf32> to vector<8x1xf32>
    %35 = tpu.reciprocal %34 {approx = true} : vector<8x1xf32> -> vector<8x1xf32>
    %36 = vector.broadcast %35 : vector<8x1xf32> to vector<8x8xf32>
    %37 = arith.mulf %32, %36 : vector<8x8xf32>
    %38 = arith.truncf %37 : vector<8x8xf32> to vector<8x8xbf16>
    %cst_19 = arith.constant dense<0.000000e+00> : vector<8x32xf32>
    %39 = tpu.matmul %38, %26, %cst_19 {dimension_numbers = #tpu.dot_dimension_numbers<[1], [0], [0], [1], [0, 0, 1, 1], [], []>} : vector<8x8xbf16>, vector<8x32xbf16>, vector<8x32xf32> -> vector<8x32xf32>
    %c0_20 = arith.constant 0 : index
    %c0_21 = arith.constant 0 : index
    %40 = vector.load %arg7[%c0_20, %c0_21] : memref<16x32xf32, #tpu.memory_space<vmem>>, vector<8x32xf32>
    tpu.vector_store %arg7[%c0_20, %c0_21], %39 {strides = array<i32>} : memref<16x32xf32, #tpu.memory_space<vmem>>, vector<8x32xf32>,
    %41 = vector.extract_strided_slice %15 {offsets = [8, 0], sizes = [8, 32], strides = [1, 1]} : vector<16x32xf32> to vector<8x32xf32>
    %42 = arith.truncf %41 : vector<8x32xf32> to vector<8x32xbf16>
    %43 = vector.extract_strided_slice %16 {offsets = [8, 0], sizes = [8, 32], strides = [1, 1]} : vector<16x32xf32> to vector<8x32xf32>
    %44 = arith.truncf %43 : vector<8x32xf32> to vector<8x32xbf16>
    %45 = vector.extract_strided_slice %20 {offsets = [8, 0], sizes = [8, 32], strides = [1, 1]} : vector<16x32xf32> to vector<8x32xf32>
    %46 = arith.truncf %45 : vector<8x32xf32> to vector<8x32xbf16>
    %cst_22 = arith.constant dense<0.000000e+00> : vector<8x8xf32>
    %47 = tpu.matmul %42, %44, %cst_22 {dimension_numbers = #tpu.dot_dimension_numbers<[1], [1], [0], [0], [0, 0, 1, 0], [], []>} : vector<8x32xbf16>, vector<8x32xbf16>, vector<8x8xf32> -> vector<8x8xf32>
    %cst_23 = arith.constant dense<0xFF800000> : vector<8xf32>
    %48 = vector.multi_reduction <maximumf>, %47, %cst_23 [1] : vector<8x8xf32> to vector<8xf32>
    %49 = vector.shape_cast %48 : vector<8xf32> to vector<8x1xf32>
    %50 = vector.broadcast %49 : vector<8x1xf32> to vector<8x8xf32>
    %51 = arith.subf %47, %50 : vector<8x8xf32>
    %52 = math.exp %51 : vector<8x8xf32>
    %cst_24 = arith.constant dense<0.000000e+00> : vector<8xf32>
    %53 = vector.multi_reduction <add>, %52, %cst_24 [1] : vector<8x8xf32> to vector<8xf32>
    %54 = vector.shape_cast %53 : vector<8xf32> to vector<8x1xf32>
    %55 = tpu.reciprocal %54 {approx = true} : vector<8x1xf32> -> vector<8x1xf32>
    %56 = vector.broadcast %55 : vector<8x1xf32> to vector<8x8xf32>
    %57 = arith.mulf %52, %56 : vector<8x8xf32>
    %58 = arith.truncf %57 : vector<8x8xf32> to vector<8x8xbf16>
    %cst_25 = arith.constant dense<0.000000e+00> : vector<8x32xf32>
    %59 = tpu.matmul %58, %46, %cst_25 {dimension_numbers = #tpu.dot_dimension_numbers<[1], [0], [0], [1], [0, 0, 1, 1], [], []>} : vector<8x8xbf16>, vector<8x32xbf16>, vector<8x32xf32> -> vector<8x32xf32>
    %c8 = arith.constant 8 : index
    %c0_26 = arith.constant 0 : index
    %60 = vector.load %arg7[%c8, %c0_26] : memref<16x32xf32, #tpu.memory_space<vmem>>, vector<8x32xf32>
    tpu.vector_store %arg7[%c8, %c0_26], %59 {strides = array<i32>} : memref<16x32xf32, #tpu.memory_space<vmem>>, vector<8x32xf32>,
    return
  }
}

</mosaic_0001>

<bundles_post_ra>
// kernel: tpu_custom_call.1
= control target key start
LH: loop header
LB: loop body
LE: loop exit
PB: predicated region body
PF: predicated region fallthrough
CT: control target
= control target key end

     0   :  { %12 = vsyncpa [#allocation3], 0  ;;  %s934_s0 = inlined_call_operand.hbm [shape: f32[16,32], index: 0, kind: input, shape index: {}]   ;;  %s935_s1 = inlined_call_operand.hbm [shape: f32[16,32], index: 1, kind: input, shape index: {}]   ;;  %s936_s2 = inlined_call_operand.hbm [shape: f32[32,32], index: 2, kind: input, shape index: {}]   ;;  %s937_s3 = inlined_call_operand.vmem [shape: f32[1,32], index: 3, kind: input, shape index: {}]   ;;  %s938_s4 = inlined_call_operand.hbm [shape: f32[32,32], index: 4, kind: input, shape index: {}]   ;;  %s939_s5 = inlined_call_operand.hbm [shape: f32[32,32], index: 5, kind: input, shape index: {}]   ;;  %s940_s6 = inlined_call_operand.vmem [shape: f32[1,32], index: 6, kind: input, shape index: {}]   ;;  %s941_s7 = inlined_call_operand.hbm [shape: f32[16,32], index: 7, kind: output, shape index: {}]  }
   0x1   :  { %13 = vsyncpa [#allocation6], 0 }
   0x2   :  { %14 = vsyncpa [#allocation9], 0 }
   0x3   :  { %15 = vsyncpa [#allocation4], 0  ;;  %s735_s24 = smov [#allocation5]   ;;  %s736_s26 = smov [#allocation8]  }
   0x4   :  { %s33_s25 = sshll.u32 %s735_s24, 4  ;;  %s59_s27 = sshll.u32 %s736_s26, 4  ;;  %s34_s25 = int_to_ptr.vmem [resolvable:$true] %s33_s25  ;;  %s785_s27 = int_to_ptr.vmem [resolvable:$true] %s59_s27 }
   0x5   :  { %s595_s30 = scalar_lea.hbm %s935_s1, 256 }
   0x6   :  { %p596_p0 = scmp.ne.s32.totalorder %s935_s1, %s595_s30  ;;  %p599_p1 = scmp.lt.u32.totalorder %s595_s30, %s935_s1 }
   0x8   :  { %p601_p2 = pnand %p599_p1, %p596_p0 }
   0xa   :  { %604 = shalt.err (!%p601_p2)
}
   0xb   :  { %s605_s12 = scalar_lea.vmem %s34_s25, 256  ;;  %p610_p4 = scmp.lt.s32.totalorder %s34_s25, %s34_s25 }
   0xc   :  { %p606_p3 = scmp.ne.s32.totalorder %s34_s25, %s605_s12  ;;  %p611_p5 = scmp.lt.s32.totalorder %s605_s12, %s605_s12 }
   0xe   :  { %p612_p6 = por %p611_p5, %p610_p4 }
  0x10   :  { %p613_p7 = pnand %p612_p6, %p606_p3 }
  0x12   :  { %616 = shalt.err (!%p613_p7)
}
  0x13   :  { %s737_s13 = smov 128   ;;  %s738_s14 = smov 8  }
  0x14   :  { %39 = dma.hbm_to_vmem [thread:$0]  %s935_s1, 256, %s34_s25, [#allocation6], %s737_s13, %s737_s13, %s738_s14  }
  0x15   :  { %s617_s19 = scalar_lea.hbm %s938_s4, 512 }
  0x16   :  { %p618_p8 = scmp.ne.s32.totalorder %s938_s4, %s617_s19  ;;  %p621_p9 = scmp.lt.u32.totalorder %s617_s19, %s938_s4 }
  0x18   :  { %p623_p10 = pnand %p621_p9, %p618_p8 }
  0x1a   :  { %626 = shalt.err (!%p623_p10)
}
  0x1b   :  { %s627_s24 = scalar_lea.vmem %s785_s27, 512  ;;  %p632_p12 = scmp.lt.s32.totalorder %s785_s27, %s785_s27 }
  0x1c   :  { %p628_p11 = scmp.ne.s32.totalorder %s785_s27, %s627_s24  ;;  %p633_p13 = scmp.lt.s32.totalorder %s627_s24, %s627_s24 }
  0x1e   :  { %p634_p0 = por %p633_p13, %p632_p12 }
  0x20   :  { %p635_p1 = pnand %p634_p0, %p628_p11 }
  0x22   :  { %638 = shalt.err (!%p635_p1)
}
  0x23   :  { %65 = dma.hbm_to_vmem [thread:$0]  %s938_s4, 512, %s785_s27, [#allocation9], %s737_s13, %s737_s13, %s738_s14  }
  0x24   :  { %s739_s26 = smov [#allocation2]   ;;  %s740_s29 = smov [#allocation7]  }
  0x25   :  { %s21_s28 = sshll.u32 %s739_s26, 4  ;;  %s45_s30 = sshll.u32 %s740_s29, 4  ;;  %s22_s28 = int_to_ptr.vmem [resolvable:$true] %s21_s28  ;;  %s822_s30 = int_to_ptr.vmem [resolvable:$true] %s45_s30 }
  0x26   :  { %s639_s10 = scalar_lea.hbm %s934_s0, 256 }
  0x27   :  { %p640_p2 = scmp.ne.s32.totalorder %s934_s0, %s639_s10  ;;  %p643_p3 = scmp.lt.u32.totalorder %s639_s10, %s934_s0 }
  0x29   :  { %p645_p4 = pnand %p643_p3, %p640_p2 }
  0x2b   :  { %648 = shalt.err (!%p645_p4)
}
  0x2c   :  { %s649_s4 = scalar_lea.vmem %s22_s28, 256  ;;  %p654_p6 = scmp.lt.s32.totalorder %s22_s28, %s22_s28 }
  0x2d   :  { %p650_p5 = scmp.ne.s32.totalorder %s22_s28, %s649_s4  ;;  %p655_p7 = scmp.lt.s32.totalorder %s649_s4, %s649_s4 }
  0x2f   :  { %p656_p8 = por %p655_p7, %p654_p6 }
  0x31   :  { %p657_p9 = pnand %p656_p8, %p650_p5 }
  0x33   :  { %660 = shalt.err (!%p657_p9)
}
  0x34   :  { %27 = dma.hbm_to_vmem [thread:$0]  %s934_s0, 256, %s22_s28, [#allocation3], %s737_s13, %s737_s13, %s738_s14  }
  0x35   :  { %s661_s20 = scalar_lea.hbm %s936_s2, 512 }
  0x36   :  { %p662_p10 = scmp.ne.s32.totalorder %s936_s2, %s661_s20  ;;  %p665_p11 = scmp.lt.u32.totalorder %s661_s20, %s936_s2 }
  0x38   :  { %p667_p12 = pnand %p665_p11, %p662_p10 }
  0x3a   :  { %670 = shalt.err (!%p667_p12)
}
  0x3b   :  { %s671_s1 = scalar_lea.vmem %s822_s30, 512  ;;  %p676_p0 = scmp.lt.s32.totalorder %s822_s30, %s822_s30 }
  0x3c   :  { %p672_p13 = scmp.ne.s32.totalorder %s822_s30, %s671_s1  ;;  %p677_p1 = scmp.lt.s32.totalorder %s671_s1, %s671_s1 }
  0x3e   :  { %p678_p2 = por %p677_p1, %p676_p0 }
  0x40   :  { %p679_p3 = pnand %p678_p2, %p672_p13 }
  0x42   :  { %682 = shalt.err (!%p679_p3)
}
  0x43   :  { %51 = dma.hbm_to_vmem [thread:$0]  %s936_s2, 512, %s822_s30, [#allocation6], %s737_s13, %s737_s13, %s738_s14  }
  0x44   :  { %s741_s26 = smov [#allocation10]   ;;  %s683_s9 = scalar_lea.hbm %s939_s5, 512 }
  0x45   :  { %s71_s28 = sshll.u32 %s741_s26, 4  ;;  %p684_p4 = scmp.ne.s32.totalorder %s939_s5, %s683_s9  ;;  %s72_s28 = int_to_ptr.vmem [resolvable:$true] %s71_s28 }
  0x46   :  { %p687_p5 = scmp.lt.u32.totalorder %s683_s9, %s939_s5 }
  0x48   :  { %p689_p6 = pnand %p687_p5, %p684_p4 }
  0x4a   :  { %692 = shalt.err (!%p689_p6)
}
  0x4b   :  { %s693_s16 = scalar_lea.vmem %s72_s28, 512  ;;  %p698_p8 = scmp.lt.s32.totalorder %s72_s28, %s72_s28 }
  0x4c   :  { %p694_p7 = scmp.ne.s32.totalorder %s72_s28, %s693_s16  ;;  %p699_p9 = scmp.lt.s32.totalorder %s693_s16, %s693_s16 }
  0x4e   :  { %p700_p10 = por %p699_p9, %p698_p8 }
  0x50   :  { %p701_p11 = pnand %p700_p10, %p694_p7 }
  0x52   :  { %704 = shalt.err (!%p701_p11)
}
  0x53   :  { %77 = dma.hbm_to_vmem [thread:$0]  %s939_s5, 512, %s72_s28, [#allocation9], %s737_s13, %s737_s13, %s738_s14  }
  0x54   :  { %727 = dma.done.wait [#allocation3], 256  }
  0x55   :  { %728 = vsyncadd [#allocation3], 4294967040 }
  0x56   :  { %729 = dma.done.wait [#allocation6], 768  }
  0x57   :  { %730 = vsyncadd [#allocation6], 4294966528 }
  0x58   :  { %731 = dma.done.wait [#allocation9], 1024  }
  0x59   :  { %732 = vsyncadd [#allocation9], 4294966272  ;;  %v742_v0 = vmov 0.0   ;;  %vm743_vm0 = vmmov 0   ;;  %v108_v1 = vld [vmem:[#allocation8] sm:$0xff]  ;;  %v109_v2 = vld [vmem:[#allocation8 + $0x8] sm:$0xff] }
  0x5a   :  { %537 = vmatprep.subr.bf16.mxu1 %v742_v0  ;;  %529 = vmatprep.subr.bf16.mxu0 %v742_v0  ;;  %v102_v3 = vld [vmem:[#allocation7] sm:$0xff]  ;;  %v112_v4 = vpack.c.bf16 %v109_v2, %v108_v1  ;;  %v103_v5 = vld [vmem:[#allocation7 + $0x8] sm:$0xff]  ;;  %v110_v6 = vld [vmem:[#allocation8 + $0x10] sm:$0xff]  ;;  %vm127_vm1 = vcmask 261120   ;;  %vm315_vm2 = vcmask 64512   ;;  %vm331_vm3 = vcmask 1043456  }
  0x5b   :  { %541 = vmatprep.mubr.msk.bf16.mxu1 %vm743_vm0, %v742_v0  ;;  %533 = vmatprep.mubr.msk.bf16.mxu0 %vm743_vm0, %v742_v0  ;;  %v111_v7 = vld [vmem:[#allocation8 + $0x18] sm:$0xff]  ;;  %v106_v8 = vpack.c.bf16 %v103_v5, %v102_v3  ;;  %v104_v9 = vld [vmem:[#allocation7 + $0x10] sm:$0xff]  ;;  %v96_v15 = vld [vmem:[#allocation2] sm:$0xff] }
  0x5c   :  { %v105_v10 = vld [vmem:[#allocation7 + $0x18] sm:$0xff]  ;;  %538 = vmatpush3.bf16.msra.mxu1 %v112_v4  ;;  %v113_v11 = vpack.c.bf16 %v111_v7, %v110_v6  ;;  %v99_v12 = vld [vmem:[#allocation5] sm:$0xff]  ;;  %v97_v16 = vld [vmem:[#allocation2 + $0x8] sm:$0xff] }
  0x5d   :  { %v100_v13 = vld [vmem:[#allocation5 + $0x8] sm:$0xff]  ;;  %530 = vmatpush3.bf16.msra.mxu0 %v106_v8  ;;  %539 = vmatprep.subr.bf16.mxu1 %v742_v0  ;;  %v107_v14 = vpack.c.bf16 %v105_v10, %v104_v9  ;;  %v98_v18 = vpack.c.bf16 %v97_v16, %v96_v15  ;;  %v503_v19 = vld [vmem:[%s937_s3] ss:$0 sm:$0xff]  ;;  %v115_v39 = vld [vmem:[#allocation10 + $0x8] sm:$0xff] }
  0x5e   :  { %531 = vmatprep.subr.bf16.mxu0 %v742_v0  ;;  %v101_v17 = vpack.c.bf16 %v100_v13, %v99_v12  ;;  %v114_v38 = vld [vmem:[#allocation10] sm:$0xff]  ;;  %v116_v40 = vld [vmem:[#allocation10 + $0x10] sm:$0xff]  ;;  %v117_v42 = vld [vmem:[#allocation10 + $0x18] sm:$0xff] }
  0x5f   :  { %v118_v41 = vpack.c.bf16 %v115_v39, %v114_v38  ;;  %v119_v43 = vpack.c.bf16 %v117_v42, %v116_v40  ;;  %v506_v3 = vld [vmem:[%s940_s6] ss:$0 sm:$0xff]  ;;  %s744_s6 = smov [#allocation11]  }
  0x60   :  { %540 = vmatpush3.bf16.msra.mxu1 %v113_v11  ;;  %s489_s17 = sshll.u32 %s744_s6, 4  ;;  %s490_s17 = int_to_ptr.vmem [resolvable:$true] %s489_s17 }
  0x61   :  { %532 = vmatpush3.bf16.msra.mxu0 %v107_v14  ;;  %553 = vmatprep.subr.bf16.mxu1 %v742_v0  ;;  %s705_s18 = scalar_lea.vmem %s490_s17, 256  ;;  %p710_p13 = scmp.lt.s32.totalorder %s490_s17, %s490_s17 }
  0x62   :  { %545 = vmatprep.subr.bf16.mxu0 %v742_v0  ;;  %p706_p12 = scmp.ne.s32.totalorder %s490_s17, %s705_s18  ;;  %p711_p0 = scmp.lt.s32.totalorder %s705_s18, %s705_s18 }
  0x63   :  { %542 = vmatmul.mubr.msk.bf16.vlgmr.msra.gmra.mrb[0].mxu1 %vm127_vm1, %v101_v17 }
  0x64   :  { %534 = vmatmul.mubr.msk.bf16.vlgmr.msra.gmra.mrb[0].mxu0 %vm127_vm1, %v98_v18  ;;  %555 = vmatprep.mubr.msk.bf16.mxu1 %vm743_vm0, %v742_v0  ;;  %p712_p1 = por %p711_p0, %p710_p13 }
  0x65   :  { %549 = vmatprep.mubr.msk.bf16.mxu0 %vm743_vm0, %v742_v0  ;;  %546 = vmatpush3.bf16.msra.mxu0 %v118_v41 }
  0x66   :  { %547 = vmatprep.subr.bf16.mxu0 %v742_v0  ;;  %p713_p2 = pnand %p712_p1, %p706_p12 }
  0x69   :  { %548 = vmatpush3.bf16.msra.mxu0 %v119_v43 }
  0x6a   :  { %559 = vmatprep.subr.bf16.mxu0 %v742_v0 }
  0x6c   :  { %550 = vmatmul.mubr.msk.bf16.vlgmr.msra.gmra.mrb[4].mxu0 %vm127_vm1, %v101_v17 }
  0x6d   :  { %561 = vmatprep.mubr.msk.bf16.mxu0 %vm743_vm0, %v742_v0 }
 0x136   :  { %v211_v20 = vpop.f32.mrb[0].mxu1 }
 0x137   :  { %v267_v21 = vpack.c.bf16 %v211_v20, %v211_v20  ;;  %v543_v22 = vpop.f32.mrb[1].mxu1  ;;  %v165_v23 = vpop.f32.mrb[0].mxu0 }
 0x138   :  { %v166_v24 = vadd.f32 %v503_v19, %v165_v23  ;;  %v214_v25 = vpop.f32.mrb[2].mxu1  ;;  %v535_v26 = vpop.f32.mrb[1].mxu0 }
 0x139   :  { %v273_v27 = vsel %vm127_vm1, %v267_v21, 0  ;;  %v544_v28 = vpop.f32.mrb[3].mxu1  ;;  %v168_v29 = vpop.f32.mrb[2].mxu0  ;;  %v377_v33 = vpack.c.bf16 %v214_v25, %v214_v25 }
 0x13a   :  { %v172_v30 = vmul.f32 0.17677669, %v166_v24  ;;  %554 = vmatpush3.bf16.xpose.msra.mxu1 %v273_v27  ;;  %v536_v31 = vpop.f32.mrb[3].mxu0  ;;  %v169_v34 = vadd.f32 %v503_v19, %v168_v29 }
 0x13b   :  { %565 = vmatprep.subr.bf16.mxu1 %v742_v0  ;;  %v383_v35 = vsel %vm127_vm1, %v377_v33, 0 }
 0x13c   :  { %v266_v32 = vpack.c.bf16 %v172_v30, %v172_v30  ;;  %v173_v36 = vmul.f32 0.17677669, %v169_v34 }
 0x13e   :  { %v376_v37 = vpack.c.bf16 %v173_v36, %v173_v36 }
 0x13f   :  { %v259_v1 = vpop.f32.mrb[4].mxu0 }
 0x140   :  { %v551_v2 = vpop.f32.mrb[5].mxu0  ;;  %v260_v5 = vadd.f32 %v506_v3, %v259_v1 }
 0x141   :  { %556 = vmatmul.mubr.msk.bf16.vlgmr.msra.gmra.mrb[4].mxu1 %vm127_vm1, %v266_v32  ;;  %v262_v4 = vpop.f32.mrb[6].mxu0 }
 0x142   :  { %566 = vmatpush3.bf16.xpose.msra.mxu1 %v383_v35  ;;  %567 = vmatprep.mubr.msk.bf16.mxu1 %vm743_vm0, %v742_v0  ;;  %v552_v6 = vpop.f32.mrb[7].mxu0  ;;  %v263_v7 = vadd.f32 %v506_v3, %v262_v4  ;;  %v268_v8 = vpack.c.bf16 %v260_v5, %v260_v5 }
 0x144   :  { %v378_v9 = vpack.c.bf16 %v263_v7, %v263_v7  ;;  %v333_v10 = vsel %vm331_vm3, %v268_v8, 0 }
 0x145   :  { %560 = vmatpush3.bf16.msra.mxu0 %v333_v10 }
 0x146   :  { %v441_v11 = vsel %vm331_vm3, %v378_v9, 0  ;;  %571 = vmatprep.subr.bf16.mxu0 %v742_v0 }
 0x149   :  { %568 = vmatmul.mubr.msk.bf16.vlgmr.msra.gmra.mrb[8].mxu1 %vm127_vm1, %v376_v37 }
 0x214   :  { %v309_v44 = vpop.f32.mrb[4].mxu1 }
 0x215   :  { %v557_v45 = vpop.f32.mrb[5].mxu1  ;;  %v316_v46 = vsel %vm315_vm2, %v309_v44, -inf }
 0x216   :  { %317 = vmax.xlane.f32.xlu0 %v316_v46  ;;  %v312_v47 = vpop.f32.mrb[6].mxu1 }
 0x217   :  { %v558_v48 = vpop.f32.mrb[7].mxu1 }
 0x21c   :  { %v419_v49 = vpop.f32.mrb[8].mxu1 }
 0x21d   :  { %v569_v50 = vpop.f32.mrb[9].mxu1  ;;  %v425_v51 = vsel %vm315_vm2, %v419_v49, -inf }
 0x21e   :  { %426 = vmax.xlane.f32.xlu0 %v425_v51  ;;  %v422_v52 = vpop.f32.mrb[10].mxu1 }
 0x21f   :  { %v570_v53 = vpop.f32.mrb[11].mxu1 }
 0x2a3   :  { %v318_v54 = vpop.xlane.xlu0 %317 }
 0x2a4   :  { %v319_v55 = vsub.f32 %v309_v44, %v318_v54 }
 0x2a6   :  { %v320_v56 = vmul.f32 1.442695, %v319_v55 }
 0x2a8   :  { %587 = vpow2.f32 %v320_v56 }
 0x2ab   :  { %v427_v57 = vpop.xlane.xlu0 %426 }
 0x2ac   :  { %v428_v58 = vsub.f32 %v419_v49, %v427_v57 }
 0x2ae   :  { %v429_v59 = vmul.f32 1.442695, %v428_v58 }
 0x2b0   :  { %589 = vpow2.f32 %v429_v59 }
 0x2b2   :  { %v588_v60 = vpop.eup %587 }
 0x2b3   :  { %v322_v61 = vsel %vm315_vm2, %v588_v60, 0.0 }
 0x2b4   :  { %323 = vadd.xlane.f32.xlu1 %v322_v61 }
 0x2ba   :  { %v590_v62 = vpop.eup %589 }
 0x2bb   :  { %v431_v63 = vsel %vm315_vm2, %v590_v62, 0.0 }
 0x2bc   :  { %432 = vadd.xlane.f32.xlu1 %v431_v63 }
 0x341   :  { %v324_v12 = vpop.xlane.xlu1 %323 }
 0x342   :  { %591 = vrcp.f32 %v324_v12 }
 0x349   :  { %v433_v13 = vpop.xlane.xlu1 %432 }
 0x34a   :  { %593 = vrcp.f32 %v433_v13 }
 0x34c   :  { %v592_v14 = vpop.eup %591 }
 0x34d   :  { %v326_v15 = vmul.f32 %v592_v14, %v588_v60 }
 0x34f   :  { %v327_v16 = vpack.c.bf16 %v326_v15, %v326_v15 }
 0x351   :  { %562 = vmatmul.mubr.msk.bf16.vlgmr.msra.gmra.mrb[8].mxu0 %vm315_vm2, %v327_v16 }
 0x352   :  { %572 = vmatpush3.bf16.msra.mxu0 %v441_v11  ;;  %573 = vmatprep.mubr.msk.bf16.mxu0 %vm743_vm0, %v742_v0 }
 0x354   :  { %v594_v17 = vpop.eup %593 }
 0x355   :  { %v435_v18 = vmul.f32 %v594_v17, %v590_v62 }
 0x357   :  { %v436_v19 = vpack.c.bf16 %v435_v18, %v435_v18 }
 0x359   :  { %574 = vmatmul.mubr.msk.bf16.vlgmr.msra.gmra.mrb[12].mxu0 %vm315_vm2, %v436_v19 }
 0x424   :  { %v369_v20 = vpop.f32.mrb[8].mxu0 }
 0x425   :  { %375 = vst.msk [vmem:[#allocation11] sm:$0xff] %vm127_vm1, %v369_v20  ;;  %v563_v21 = vpop.f32.mrb[9].mxu0 }
 0x426   :  { %v372_v22 = vpop.f32.mrb[10].mxu0 }
 0x427   :  { %v564_v23 = vpop.f32.mrb[11].mxu0 }
 0x42c   :  { %v477_v24 = vpop.f32.mrb[12].mxu0 }
 0x42d   :  { %483 = vst.msk [vmem:[#allocation11 + $0x8] sm:$0xff] %vm127_vm1, %v477_v24  ;;  %v575_v25 = vpop.f32.mrb[13].mxu0 }
 0x42e   :  { %v480_v26 = vpop.f32.mrb[14].mxu0 }
 0x42f   :  { %716 = shalt.err (!%p713_p2)
}
 0x430   :  { %s717_s21 = scalar_lea.hbm %s941_s7, 256 }
 0x431   :  { %p718_p3 = scmp.ne.s32.totalorder %s941_s7, %s717_s21  ;;  %p721_p4 = scmp.lt.u32.totalorder %s717_s21, %s941_s7 }
 0x433   :  { %p723_p5 = pnand %p721_p4, %p718_p3 }
 0x435   :  { %726 = shalt.err (!%p723_p5)
}
 0x436   :  { %495 = dma.vmem_to_hbm [thread:$0]  %s490_s17, 256, %s941_s7, [#allocation4], %s737_s13, %s737_s13, %s738_s14   ;;  %v576_v0 = vpop.f32.mrb[15].mxu0 }
 0x437   :  { %733 = dma.done.wait [#allocation4], 256  }
 0x438   :  { %734 = vsyncadd [#allocation4], 4294967040 }
 0x439   :  { %499 = vsyncpa [#allocation3], 1 }
 0x43a   :  { %500 = vsyncpa [#allocation6], 1 }
 0x43b   :  { %501 = vsyncpa [#allocation9], 1 }
 0x43c   :  { %502 = vsyncpa [#allocation4], 1 }

</bundles_post_ra>
